<compile_context>
chip_gen: v7x
topology: tpu7x:2x2x1
jax: 0.10.0
libtpu: 0.0.40
codegen_flags: <defaults>
</compile_context>

<pallas_src>
import jax
import jax.numpy as jnp
from jax import lax
from jax.experimental import pallas as pl
from jax.experimental.pallas import tpu as pltpu


def _round_up(x, m):
    return (x + m - 1) // m * m


def bottleneck(x, w1, bn1, w2, bn2, w3, bn3, eps=1e-5, matmul_dtype=jnp.float32):
    """Bottleneck forward (stride=1, downsample=None, inference-mode BN).

    x:  (N, Cin, L) f32, Cin == planes * 4 (identity residual).
    w1: (planes, Cin, 1)     conv1x1, bias=False
    w2: (planes, planes, 3)  conv3x1, padding=1, bias=False
    w3: (Cout, planes, 1)    conv1x1, Cout == planes * 4 == Cin
    bn* = (gamma, beta, running_mean, running_var), per-channel.
    """
    # TODO(synk): stride>1 and the downsample branch are not implemented (default
    # Bottleneck config uses stride=1 / downsample=None, i.e. identity residual).
    N, Cin, L = x.shape
    P = w1.shape[0]
    Cout = w3.shape[0]
    assert Cout == Cin, "identity residual requires inplanes == planes * expansion"

    def fold(bn):
        g, b, m, v = bn
        s = g / jnp.sqrt(v + eps)
        return s.astype(jnp.float32), (b - m * s).astype(jnp.float32)

    s1, b1 = fold(bn1)
    s2, b2 = fold(bn2)
    s3, b3 = fold(bn3)

    # Fold BN scale into conv weight output rows; pad planes up to a multiple of 8 so
    # the bottleneck-width sublane tiles don't trigger relayout copies.
    Pp = _round_up(P, 8)
    pad_p = Pp - P

    w1f = jnp.pad(w1[:, :, 0] * s1[:, None], ((0, pad_p), (0, 0)))            # (Pp, Cin)
    w2f = jnp.stack(
        [jnp.pad(w2[:, :, k] * s2[:, None], ((0, pad_p), (0, pad_p)))
         for k in range(3)], axis=0)                                          # (3, Pp, Pp)
    w3f = jnp.pad(w3[:, :, 0] * s3[:, None], ((0, 0), (0, pad_p)))            # (Cout, Pp)

    w1f = w1f.astype(matmul_dtype)
    w2f = w2f.astype(matmul_dtype)
    w3f = w3f.astype(matmul_dtype)

    b1p = jnp.pad(b1, (0, pad_p)).reshape(Pp, 1).astype(jnp.float32)
    b2p = jnp.pad(b2, (0, pad_p)).reshape(Pp, 1).astype(jnp.float32)
    b3c = b3.reshape(Cout, 1).astype(jnp.float32)

    x = x.astype(jnp.float32)
    mxu_dt = matmul_dtype

    def kernel(x_ref, w1_ref, w2_ref, w3_ref, b1_ref, b2_ref, b3_ref, o_ref):
        xv = x_ref[...]                                                       # (Cin, L) f32

        # conv1 (1x1) + bn1 (scale folded into weights) + relu.
        h = jnp.dot(w1_ref[...], xv.astype(mxu_dt),
                    preferred_element_type=jnp.float32)                       # (Pp, L)
        h = jnp.maximum(h + b1_ref[...], 0.0)

        # conv2 (3x1, padding=1) as three accumulating MXU dots + bn2 + relu.
        # Neighbour taps via XLU roll (non-negative shifts); per-sample tile means the
        # boundary mask is a static lane compare (no modulo).
        lane = lax.broadcasted_iota(jnp.int32, h.shape, 1)
        h_lm1 = jnp.where(lane == 0, 0.0, pltpu.roll(h, 1, axis=1))           # h[:, l-1]
        h_lp1 = jnp.where(lane == L - 1, 0.0, pltpu.roll(h, L - 1, axis=1))   # h[:, l+1]
        h2 = (jnp.dot(w2_ref[0], h_lm1.astype(mxu_dt), preferred_element_type=jnp.float32)
              + jnp.dot(w2_ref[1], h.astype(mxu_dt), preferred_element_type=jnp.float32)
              + jnp.dot(w2_ref[2], h_lp1.astype(mxu_dt), preferred_element_type=jnp.float32))
        h2 = jnp.maximum(h2 + b2_ref[...], 0.0)                               # (Pp, L)

        # conv3 (1x1) + bn3 + identity residual + relu.
        out = jnp.dot(w3_ref[...], h2.astype(mxu_dt),
                      preferred_element_type=jnp.float32)                     # (Cout, L)
        o_ref[...] = jnp.maximum(out + b3_ref[...] + xv, 0.0)

    const2 = lambda a: pl.BlockSpec(a.shape, lambda n: (0, 0))
    const3 = lambda a: pl.BlockSpec(a.shape, lambda n: (0, 0, 0))

    wbytes = (w1f.size + w2f.size + w3f.size) * jnp.dtype(matmul_dtype).itemsize \
             + (b1p.size + b2p.size + b3c.size) * 4
    cost = pl.CostEstimate(
        flops=2 * N * L * (Pp * Cin + 3 * Pp * Pp + Cout * Pp),
        transcendentals=0,
        bytes_accessed=(Cin + Cout) * N * L * 4 + wbytes)

    out = pl.pallas_call(
        kernel,
        out_shape=jax.ShapeDtypeStruct((N, Cout, L), jnp.float32),
        grid_spec=pltpu.PrefetchScalarGridSpec(
            num_scalar_prefetch=0,
            # One sample per step, directly in the module's (N, C, L) layout; output is
            # lane-dense for any L >= 128.
            # TODO(synk): for very long L, additionally tile L with a 1-element halo per
            # chunk; for tiny L, group several samples per step to amortize the ~0.35us
            # per-step overhead.
            grid=(N,),
            in_specs=[pl.BlockSpec((None, Cin, L), lambda n: (n, 0, 0)),
                      const2(w1f), const3(w2f), const2(w3f),
                      const2(b1p), const2(b2p), const2(b3c)],
            out_specs=pl.BlockSpec((None, Cout, L), lambda n: (n, 0, 0)),
        ),
        compiler_params=pltpu.CompilerParams(
            dimension_semantics=("parallel",)),
        cost_estimate=cost,
    )(x, w1f, w2f, w3f, b1p, b2p, b3c)

    return out


if __name__ == "__main__":
    # Small shapes: batch=2, planes=8, inplanes = planes*4 = 32, length=128.
    N, planes, L = 2, 8, 128
    Cin = Cout = planes * 4

    key = jax.random.PRNGKey(0)
    keys = jax.random.split(key, 16)

    x = jax.random.normal(keys[0], (N, Cin, L), dtype=jnp.float32)

    # Conv weights, PyTorch layout (out_channels, in_channels, kernel_size), bias=False.
    w1 = jax.random.normal(keys[1], (planes, Cin, 1), dtype=jnp.float32) * 0.1
    w2 = jax.random.normal(keys[2], (planes, planes, 3), dtype=jnp.float32) * 0.1
    w3 = jax.random.normal(keys[3], (Cout, planes, 1), dtype=jnp.float32) * 0.1

    def make_bn(c, k0, k1, k2, k3):
        return (1.0 + 0.1 * jax.random.normal(k0, (c,), dtype=jnp.float32),   # gamma
                0.1 * jax.random.normal(k1, (c,), dtype=jnp.float32),         # beta
                0.1 * jax.random.normal(k2, (c,), dtype=jnp.float32),         # running_mean
                1.0 + 0.1 * jax.random.uniform(k3, (c,), dtype=jnp.float32))  # running_var

    bn1 = make_bn(planes, keys[4], keys[5], keys[6], keys[7])
    bn2 = make_bn(planes, keys[8], keys[9], keys[10], keys[11])
    bn3 = make_bn(Cout, keys[12], keys[13], keys[14], keys[15])

    out = bottleneck(x, w1, bn1, w2, bn2, w3, bn3)
    jax.block_until_ready(out)

    # Pure-JAX reference (same inference-mode BN semantics as the kernel).
    def ref(x):
        def c1(h, w):
            return jnp.einsum('oi,nil->nol', w[:, :, 0], h)

        def c3(h, w):
            hp = jnp.pad(h, ((0, 0), (0, 0), (1, 1)))
            return (jnp.einsum('oi,nil->nol', w[:, :, 0], hp[:, :, 0:L]) +
                    jnp.einsum('oi,nil->nol', w[:, :, 1], hp[:, :, 1:L + 1]) +
                    jnp.einsum('oi,nil->nol', w[:, :, 2], hp[:, :, 2:L + 2]))

        def bn(h, p):
            g, b, m, v = p
            return ((h - m[None, :, None]) / jnp.sqrt(v[None, :, None] + 1e-5)
                    * g[None, :, None] + b[None, :, None])

        h = jax.nn.relu(bn(c1(x, w1), bn1))
        h = jax.nn.relu(bn(c3(h, w2), bn2))
        h = bn(c1(h, w3), bn3)
        return jax.nn.relu(h + x)

    assert jnp.allclose(out, ref(x), atol=1e-4, rtol=1e-4)
    print("KERNEL_OK")
</pallas_src>

<mosaic_0001>
module attributes {stable_mosaic.version = 11 : i64} {
  func.func @kernel(%arg0: i32, %arg1: memref<1x32x128xf32, #tpu.memory_space<vmem>>, %arg2: memref<8x32xf32, #tpu.memory_space<vmem>>, %arg3: memref<3x8x8xf32, #tpu.memory_space<vmem>>, %arg4: memref<32x8xf32, #tpu.memory_space<vmem>>, %arg5: memref<8x1xf32, #tpu.memory_space<vmem>>, %arg6: memref<8x1xf32, #tpu.memory_space<vmem>>, %arg7: memref<32x1xf32, #tpu.memory_space<vmem>>, %arg8: memref<1x32x128xf32, #tpu.memory_space<vmem>>) attributes {dimension_semantics = [#tpu.dimension_semantics<parallel>], iteration_bounds = array<i64: 2>, scalar_prefetch = 0 : i64, scratch_operands = 0 : i64, tpu.core_type = #tpu.core_type<tc>, window_params = [{transform_indices = @transform_0, window_bounds = array<i64: 1, 32, 128>}, {pipeline_mode = #tpu.pipeline_mode<synchronous>, transform_indices = @transform_1, window_bounds = array<i64: 8, 32>}, {pipeline_mode = #tpu.pipeline_mode<synchronous>, transform_indices = @transform_2, window_bounds = array<i64: 3, 8, 8>}, {pipeline_mode = #tpu.pipeline_mode<synchronous>, transform_indices = @transform_3, window_bounds = array<i64: 32, 8>}, {pipeline_mode = #tpu.pipeline_mode<synchronous>, transform_indices = @transform_4, window_bounds = array<i64: 8, 1>}, {pipeline_mode = #tpu.pipeline_mode<synchronous>, transform_indices = @transform_5, window_bounds = array<i64: 8, 1>}, {pipeline_mode = #tpu.pipeline_mode<synchronous>, transform_indices = @transform_6, window_bounds = array<i64: 32, 1>}, {transform_indices = @transform_7, window_bounds = array<i64: 1, 32, 128>}]} {
    %c0 = arith.constant 0 : index
    %c0_0 = arith.constant 0 : index
    %c0_1 = arith.constant 0 : index
    %0 = vector.load %arg1[%c0, %c0_0, %c0_1] : memref<1x32x128xf32, #tpu.memory_space<vmem>>, vector<1x32x128xf32>
    %1 = vector.shape_cast %0 : vector<1x32x128xf32> to vector<32x128xf32>
    %c0_2 = arith.constant 0 : index
    %c0_3 = arith.constant 0 : index
    %2 = vector.load %arg2[%c0_2, %c0_3] : memref<8x32xf32, #tpu.memory_space<vmem>>, vector<8x32xf32>
    %cst = arith.constant dense<0.000000e+00> : vector<8x128xf32>
    %3 = tpu.matmul %2, %1, %cst {dimension_numbers = #tpu.dot_dimension_numbers<[1], [0], [0], [1], [0, 0, 1, 1], [], []>} : vector<8x32xf32>, vector<32x128xf32>, vector<8x128xf32> -> vector<8x128xf32>
    %c0_4 = arith.constant 0 : index
    %c0_5 = arith.constant 0 : index
    %4 = vector.load %arg5[%c0_4, %c0_5] : memref<8x1xf32, #tpu.memory_space<vmem>>, vector<8x1xf32>
    %5 = vector.broadcast %4 : vector<8x1xf32> to vector<8x128xf32>
    %6 = arith.addf %3, %5 : vector<8x128xf32>
    %cst_6 = arith.constant 0.000000e+00 : f32
    %7 = vector.broadcast %cst_6 : f32 to vector<8x128xf32>
    %8 = arith.maximumf %6, %7 : vector<8x128xf32>
    %9 = tpu.iota {dimensions = array<i32: 1>} : vector<8x128xi32>
    %c0_i32 = arith.constant 0 : i32
    %10 = vector.broadcast %c0_i32 : i32 to vector<8x128xi32>
    %11 = arith.cmpi eq, %9, %10 : vector<8x128xi32>
    %c1_i32 = arith.constant 1 : i32
    %12 = tpu.dynamic_rotate %8 by %c1_i32 dim 1 : vector<8x128xf32>, i32 -> vector<8x128xf32>
    %cst_7 = arith.constant 0.000000e+00 : f32
    %13 = vector.broadcast %cst_7 : f32 to vector<8x128xf32>
    %14 = arith.select %11, %13, %12 : vector<8x128xi1>, vector<8x128xf32>
    %c127_i32 = arith.constant 127 : i32
    %15 = vector.broadcast %c127_i32 : i32 to vector<8x128xi32>
    %16 = arith.cmpi eq, %9, %15 : vector<8x128xi32>
    %c127_i32_8 = arith.constant 127 : i32
    %17 = tpu.dynamic_rotate %8 by %c127_i32_8 dim 1 : vector<8x128xf32>, i32 -> vector<8x128xf32>
    %cst_9 = arith.constant 0.000000e+00 : f32
    %18 = vector.broadcast %cst_9 : f32 to vector<8x128xf32>
    %19 = arith.select %16, %18, %17 : vector<8x128xi1>, vector<8x128xf32>
    %c0_10 = arith.constant 0 : index
    %c0_11 = arith.constant 0 : index
    %c0_12 = arith.constant 0 : index
    %20 = vector.load %arg3[%c0_10, %c0_11, %c0_12] : memref<3x8x8xf32, #tpu.memory_space<vmem>>, vector<1x8x8xf32>
    %21 = vector.shape_cast %20 : vector<1x8x8xf32> to vector<8x8xf32>
    %cst_13 = arith.constant dense<0.000000e+00> : vector<8x128xf32>
    %22 = tpu.matmul %21, %14, %cst_13 {dimension_numbers = #tpu.dot_dimension_numbers<[1], [0], [0], [1], [0, 0, 1, 1], [], []>} : vector<8x8xf32>, vector<8x128xf32>, vector<8x128xf32> -> vector<8x128xf32>
    %c1 = arith.constant 1 : index
    %c0_14 = arith.constant 0 : index
    %c0_15 = arith.constant 0 : index
    %23 = vector.load %arg3[%c1, %c0_14, %c0_15] : memref<3x8x8xf32, #tpu.memory_space<vmem>>, vector<1x8x8xf32>
    %24 = vector.shape_cast %23 : vector<1x8x8xf32> to vector<8x8xf32>
    %cst_16 = arith.constant dense<0.000000e+00> : vector<8x128xf32>
    %25 = tpu.matmul %24, %8, %cst_16 {dimension_numbers = #tpu.dot_dimension_numbers<[1], [0], [0], [1], [0, 0, 1, 1], [], []>} : vector<8x8xf32>, vector<8x128xf32>, vector<8x128xf32> -> vector<8x128xf32>
    %26 = arith.addf %22, %25 : vector<8x128xf32>
    %c2 = arith.constant 2 : index
    %c0_17 = arith.constant 0 : index
    %c0_18 = arith.constant 0 : index
    %27 = vector.load %arg3[%c2, %c0_17, %c0_18] : memref<3x8x8xf32, #tpu.memory_space<vmem>>, vector<1x8x8xf32>
    %28 = vector.shape_cast %27 : vector<1x8x8xf32> to vector<8x8xf32>
    %cst_19 = arith.constant dense<0.000000e+00> : vector<8x128xf32>
    %29 = tpu.matmul %28, %19, %cst_19 {dimension_numbers = #tpu.dot_dimension_numbers<[1], [0], [0], [1], [0, 0, 1, 1], [], []>} : vector<8x8xf32>, vector<8x128xf32>, vector<8x128xf32> -> vector<8x128xf32>
    %30 = arith.addf %26, %29 : vector<8x128xf32>
    %c0_20 = arith.constant 0 : index
    %c0_21 = arith.constant 0 : index
    %31 = vector.load %arg6[%c0_20, %c0_21] : memref<8x1xf32, #tpu.memory_space<vmem>>, vector<8x1xf32>
    %32 = vector.broadcast %31 : vector<8x1xf32> to vector<8x128xf32>
    %33 = arith.addf %30, %32 : vector<8x128xf32>
    %cst_22 = arith.constant 0.000000e+00 : f32
    %34 = vector.broadcast %cst_22 : f32 to vector<8x128xf32>
    %35 = arith.maximumf %33, %34 : vector<8x128xf32>
    %c0_23 = arith.constant 0 : index
    %c0_24 = arith.constant 0 : index
    %36 = vector.load %arg4[%c0_23, %c0_24] : memref<32x8xf32, #tpu.memory_space<vmem>>, vector<32x8xf32>
    %cst_25 = arith.constant dense<0.000000e+00> : vector<32x128xf32>
    %37 = tpu.matmul %36, %35, %cst_25 {dimension_numbers = #tpu.dot_dimension_numbers<[1], [0], [0], [1], [0, 0, 1, 1], [], []>} : vector<32x8xf32>, vector<8x128xf32>, vector<32x128xf32> -> vector<32x128xf32>
    %c0_26 = arith.constant 0 : index
    %c0_27 = arith.constant 0 : index
    %38 = vector.load %arg7[%c0_26, %c0_27] : memref<32x1xf32, #tpu.memory_space<vmem>>, vector<32x1xf32>
    %39 = vector.broadcast %38 : vector<32x1xf32> to vector<32x128xf32>
    %40 = arith.addf %37, %39 : vector<32x128xf32>
    %41 = arith.addf %40, %1 : vector<32x128xf32>
    %cst_28 = arith.constant 0.000000e+00 : f32
    %42 = vector.broadcast %cst_28 : f32 to vector<32x128xf32>
    %43 = arith.maximumf %41, %42 : vector<32x128xf32>
    %c0_29 = arith.constant 0 : index
    %c0_30 = arith.constant 0 : index
    %c0_31 = arith.constant 0 : index
    %44 = vector.load %arg8[%c0_29, %c0_30, %c0_31] : memref<1x32x128xf32, #tpu.memory_space<vmem>>, vector<1x32x128xf32>
    %45 = vector.shape_cast %44 : vector<1x32x128xf32> to vector<32x128xf32>
    %46 = vector.shape_cast %43 : vector<32x128xf32> to vector<1x32x128xf32>
    tpu.vector_store %arg8[%c0_29, %c0_30, %c0_31], %46 {strides = array<i32>} : memref<1x32x128xf32, #tpu.memory_space<vmem>>, vector<1x32x128xf32>,
    return
  }
  func.func @transform_0(%arg0: i32) -> (i32, i32, i32) {
    %c0_i32 = arith.constant 0 : i32
    %c0_i32_0 = arith.constant 0 : i32
    %c0_i32_1 = arith.constant 0 : i32
    return %arg0, %c0_i32, %c0_i32_0 : i32, i32, i32
  }
  func.func @transform_1(%arg0: i32) -> (i32, i32) {
    %c0_i32 = arith.constant 0 : i32
    %c0_i32_0 = arith.constant 0 : i32
    %c0_i32_1 = arith.constant 0 : i32
    return %c0_i32, %c0_i32_0 : i32, i32
  }
  func.func @transform_2(%arg0: i32) -> (i32, i32, i32) {
    %c0_i32 = arith.constant 0 : i32
    %c0_i32_0 = arith.constant 0 : i32
    %c0_i32_1 = arith.constant 0 : i32
    %c0_i32_2 = arith.constant 0 : i32
    return %c0_i32, %c0_i32_0, %c0_i32_1 : i32, i32, i32
  }
  func.func @transform_3(%arg0: i32) -> (i32, i32) {
    %c0_i32 = arith.constant 0 : i32
    %c0_i32_0 = arith.constant 0 : i32
    %c0_i32_1 = arith.constant 0 : i32
    return %c0_i32, %c0_i32_0 : i32, i32
  }
  func.func @transform_4(%arg0: i32) -> (i32, i32) {
    %c0_i32 = arith.constant 0 : i32
    %c0_i32_0 = arith.constant 0 : i32
    %c0_i32_1 = arith.constant 0 : i32
    return %c0_i32, %c0_i32_0 : i32, i32
  }
  func.func @transform_5(%arg0: i32) -> (i32, i32) {
    %c0_i32 = arith.constant 0 : i32
    %c0_i32_0 = arith.constant 0 : i32
    %c0_i32_1 = arith.constant 0 : i32
    return %c0_i32, %c0_i32_0 : i32, i32
  }
  func.func @transform_6(%arg0: i32) -> (i32, i32) {
    %c0_i32 = arith.constant 0 : i32
    %c0_i32_0 = arith.constant 0 : i32
    %c0_i32_1 = arith.constant 0 : i32
    return %c0_i32, %c0_i32_0 : i32, i32
  }
  func.func @transform_7(%arg0: i32) -> (i32, i32, i32) {
    %c0_i32 = arith.constant 0 : i32
    %c0_i32_0 = arith.constant 0 : i32
    %c0_i32_1 = arith.constant 0 : i32
    return %arg0, %c0_i32, %c0_i32_0 : i32, i32, i32
  }
}

</mosaic_0001>

<bundles_post_ra>
// kernel: tpu_custom_call.1
= control target key start
LH: loop header
LB: loop body
LE: loop exit
PB: predicated region body
PF: predicated region fallthrough
CT: control target
= control target key end

     0   :  { %12 = vsyncpa [#allocation3], 0  ;;  %s1345_s0 = inlined_call_operand.vmem [shape: f32[2,32,128], index: 0, kind: input, shape index: {}]   ;;  %s1346_s1 = inlined_call_operand.hbm [shape: f32[8,32], index: 1, kind: input, shape index: {}]   ;;  %s1347_s2 = inlined_call_operand.vmem [shape: f32[3,8,8], index: 2, kind: input, shape index: {}]   ;;  %s1348_s3 = inlined_call_operand.vmem [shape: f32[32,8], index: 3, kind: input, shape index: {}]   ;;  %s1349_s4 = inlined_call_operand.vmem [shape: f32[8,1], index: 4, kind: input, shape index: {}]   ;;  %s1350_s5 = inlined_call_operand.vmem [shape: f32[8,1], index: 5, kind: input, shape index: {}]   ;;  %s1351_s6 = inlined_call_operand.vmem [shape: f32[32,1], index: 6, kind: input, shape index: {}]   ;;  %s1352_s7 = inlined_call_operand.hbm [shape: f32[2,32,128], index: 7, kind: output, shape index: {}]  }
   0x1   :  { %13 = vsyncpa [#allocation4], 0 }
   0x2   :  { %15 = vsyncpa [#allocation4 + $0x1], 0  ;;  %s1141_s24 = smov 0   ;;  %s1143_s25 = smov 0  }
   0x3   :  { %s1145_s26 = smov 0   ;;  %s1147_s27 = smov 0  }
   0x4 LB: > { %s1162_s28 = sadd.s32 4294967295, %s1089_s27   ;;  %s845_s29 = sadd.s32 4294967294, %s1089_s27   ;;  %s1089_s27 = sphi %s1147_s27, %s1368_s27   ;;  %s1085_s26 = sphi %s1145_s26, %s1367_s26   ;;  %s1081_s25 = sphi %s1143_s25, %s1366_s25   ;;  %s1077_s24 = sphi %s1141_s24, %s1365_s24  }
   0x5   : > { %s1166_s30 = sadd.s32 1, %s1089_s27   ;;  %s180_s8 = sadd.s32 1, %s1085_s26 }
   0x6   : > { %s177_s9 = ssub.s32 %s1089_s27, %s1166_s30  ;;  %p190_p0 = scmp.ne.s32.totalorder %s1085_s26, %s1081_s25 }
   0x7   : > { %p178_p1 = scmp.eq.s32.totalorder %s177_s9, 0  ;;  %p191_p2 = scmp.eq.s32.totalorder %s1162_s28, 1 }
   0x8   : > { %p196_p3 = scmp.ne.s32.totalorder %s1081_s25, %s1077_s24  ;;  %p197_p4 = scmp.eq.s32.totalorder %s845_s29, 1 }
   0x9   : > { %s1177_s10 = scalar_select %p178_p1, %s1085_s26, %s180_s8  }
   0xa   : > { %p1179_p5 = por %p191_p2, %p190_p0  ;;  %p1183_p6 = por %p197_p4, %p196_p3 }
   0xb   : > { %p846_p7 = scmp.ge.s32.totalorder %s1089_s27, 1  ;;  %p204_p8 = scmp.lt.s32.totalorder %s1089_s27, 3 }
   0xc   : > { %s1356_s11 = scalar_select %p1179_p5, 1, 0 }
   0xd   : > { %s1357_s12 = scalar_select %p1183_p6, 1, 0 }
   0xe   : > { %p1353_p9 = scmp.eq.s32.totalorder %s1162_s28, 0  ;;  %p1190_p10 = pnand %p846_p7, %p204_p8 }
   0xf   : > { %s1091_s14 = smov [#allocation2]   ;;  %s995_s19 = scalar_lea.hbm %s1346_s1, 128 }
  0x10   : > { %s1358_s13 = scalar_select %p1190_p10, 1, 0 }
  0x11   : > { %s217_s15 = sshll.u32 %s1091_s14, 4  ;;  %p941_p11 = pneg %p1190_p10  ;;  %s218_s15 = int_to_ptr.vmem [resolvable:$true] %s217_s15 }
  0x12   : > { %p996_p13 = scmp.ne.s32.totalorder %s1346_s1, %s995_s19  ;;  %p1002_p3 = scmp.lt.u32.totalorder %s995_s19, %s1346_s1 }
  0x13   : > { %p1198_p12 = pnand %p1353_p9, %p941_p11 }
  0x15   : > { %p997_p0 = pneg %p1198_p12 }
  0x17   : > { %p998_p1 = pnand %p997_p0, %p996_p13 }
  0x19   : > { %p999_p2 = pneg %p998_p1 }
  0x1b   : > { %p1004_p4 = pnand %p1002_p3, %p999_p2 }
  0x1d   : > { %1007 = shalt.err (!%p1004_p4)
}
  0x1e   : > { %s1008_s29 = scalar_lea.vmem %s218_s15, 128  ;;  %p1016_p9 = scmp.lt.s32.totalorder %s218_s15, %s218_s15 }
  0x1f   : > { %p1009_p7 = scmp.ne.s32.totalorder %s218_s15, %s1008_s29  ;;  %p1017_p6 = scmp.lt.s32.totalorder %s1008_s29, %s1008_s29 }
  0x21   : > { %p1011_p8 = pnand %p1009_p7, %p997_p0  ;;  %p1018_p5 = por %p1017_p6, %p1016_p9 }
  0x23   : > { %p1012_p11 = pneg %p1011_p8 }
  0x25   : > { %p1019_p10 = pnand %p1018_p5, %p1012_p11 }
  0x27   : > { %1022 = shalt.err (!%p1019_p10)
}
  0x28   : > { %944 = dma.hbm_to_vmem [thread:$0]  (!%p1198_p12), %s1346_s1, 128, %s218_s15, [#allocation3]  }
  0x29   : > { %p1360_p13 = scmp.ne.s32.totalorder %s1358_s13, 0 }
  0x2a   : > { %p1361_p1 = scmp.eq.s32.totalorder (!%p1360_p13), %s1162_s28, 0 }
  0x2b   : > { %253 = sbr.rel (%p1360_p13) target bundleno = 857 (0x359), region = 48 }
  0x32   : > { %1068 = dma.done.wait (%p1361_p1), [#allocation3], 128   ;;  %p1362_p0 = pmov %p1361_p1 }
  0x33   : > { %p285_p6 = scmp.lt.s32.totalorder %s1162_s28, 1  ;;  %v1092_v0 = vmov 0.0|0.0   ;;  %vm1093_vm0 = vmmov 0   ;;  %v1094_v1 = vmov 0.0   ;;  %v1095_v2 = vmov 0   ;;  %v295_v8 = vld [vmem:[%s1349_s4] sm:$0xff] }
  0x34   : > { %1070 = vsyncadd (%p1362_p0), [#allocation3], 4294967168  ;;  %927 = vmatprep.subr.bf16.mxu0 %v1092_v0  ;;  %901 = vmatprep.mubr.msk.f32.mxu0 %vm1093_vm0, %v1094_v1  ;;  %v294_v10 = vld [vmem:[#allocation2] sm:$0xff]  ;;  %vm301_vm1 = vcmask 261120   ;;  %v855_v16 = vld [vmem:[%s1347_s2 + $0x8] sm:$0xff]  ;;  %vm389_vm2 = vcmask 64512   ;;  %v376_v22 = vlaneseq }
  0x35   : > { %s286_s14 = scalar_select %p285_p6, %s1162_s28, 1  ;;  %993 = vset.pattern.permute.xlu0 %v1095_v2  ;;  %904 = vmatprep.subr.mxu1 %v1094_v1  ;;  %v624_v17 = vld [vmem:[%s1351_s6] sm:$0xff]  ;;  %v626_v18 = vld [vmem:[%s1351_s6 + $0x10] sm:$0xff]  ;;  %v625_v20 = vld [vmem:[%s1351_s6 + $0x8] sm:$0xff] }
  0x36   : > { %906 = vmatprep.mubr.msk.f32.mxu1 %vm1093_vm0, %v1094_v1  ;;  %994 = vset.pattern.permute.xlu1 %v1095_v2  ;;  %s1096_s22 = smov 127   ;;  %s1097_s23 = smov 1   ;;  %v612_v19 = vld [vmem:[%s1350_s5] sm:$0xff]  ;;  %v627_v21 = vld [vmem:[%s1351_s6 + $0x18] sm:$0xff]  ;;  %v377_v23 = vand.u32 127, %v376_v22  ;;  %v860_v27 = vld [vmem:[%s1347_s2 + $0x10] sm:$0xff] }
  0x37   : > { %s873_s13 = sshll.u32 %s286_s14, 5  ;;  %298 = vperm.xlu0 %993, %v295_v8   ;;  %v386_v24 = vld [vmem:[%s1347_s2] sm:$0xff]  ;;  %v622_v29 = vld [vmem:[%s1348_s3 + $0x10] sm:$0xff]  ;;  %v621_v41 = vld [vmem:[%s1348_s3 + $0x8] sm:$0xff]  ;;  %s282_s18 = sand.u32 1, %s1081_s25  }
  0x38   : > { %s289_s17 = scalar_lea.vmem %s1345_s0, %s873_s13  ;;  %vm875_vm3 = vcmp.ne.s32.totalorder %v377_v23, 0  ;;  %vm876_vm4 = vcmp.ne.s32.totalorder %v377_v23, 127  ;;  %v620_v28 = vld [vmem:[%s1348_s3] sm:$0xff]  ;;  %v623_v42 = vld [vmem:[%s1348_s3 + $0x18] sm:$0xff]  ;;  %s851_s19 = sshll.u32 %s282_s18, 5 }
  0x39   : > { %v1231_v3 = vld [vmem:[%s289_s17] sm:$0xff]  ;;  %v1233_v4 = vld [vmem:[%s289_s17 + $0x8] sm:$0xff]  ;;  %v1235_v5 = vld [vmem:[%s289_s17 + $0x10] sm:$0xff]  ;;  %s284_s20 = scalar_lea.vmem [#allocation5], %s851_s19  ;;  %p1363_p9 = scmp.ne.s32.totalorder %s1356_s11, 0 }
  0x3a   : > { %v928_v6 = vpack.c.bf16 %v1233_v4, %v1231_v3  ;;  %v1239_v7 = vld [vmem:[%s289_s17 + $0x18] sm:$0xff]  ;;  %s771_s21 = sshll.u32 %s284_s20, 4  ;;  %s1098_s14 = smov [#allocation5]   ;;  %s1297_s21 = int_to_ptr.vmem [resolvable:$true] %s771_s21 }
  0x3b   : > { %v931_v9 = vpack.c.bf16 %v1239_v7, %v1235_v5  ;;  %s1023_s9 = scalar_lea.vmem %s1297_s21, 512  ;;  %s1027_s13 = sshll.u32 %s1098_s14, 4  ;;  %s1028_s13 = int_to_ptr.vmem [resolvable:$false] %s1027_s13 }
  0x3c   : > { %929 = vmatpush3.bf16.msra.mxu0 %v928_v6  ;;  %p1024_p5 = scmp.ne.s32.totalorder %s1297_s21, %s1023_s9  ;;  %s1029_s15 = scalar_lea.vmem %s1028_s13, 1024 }
  0x3d   : > { %930 = vmatprep.subr.bf16.mxu0 %v1092_v0  ;;  %p1030_p2 = scmp.lt.s32.totalorder %s1297_s21, %s1028_s13  ;;  %p1031_p3 = scmp.lt.s32.totalorder %s1029_s15, %s1023_s9 }
  0x3e   : > { %p1025_p10 = pnand %p1024_p5, %p1363_p9 }
  0x3f   : > { %p1032_p4 = por %p1031_p3, %p1030_p2 }
  0x40   : > { %932 = vmatpush3.bf16.msra.mxu0 %v931_v9  ;;  %p1026_p12 = pneg %p1025_p10 }
  0x42   : > { %p1033_p7 = pnand %p1032_p4, %p1026_p12 }
  0x43   : > { %902 = vmatmul.mubr.msk.f32.vlgmr.msra.gmra.mrb[0].mxu0 %vm301_vm1, %v294_v10 }
  0x44   : > { %921 = vmatprep.mubr.msk.f32.mxu0 %vm389_vm2, %v620_v28 }
  0xb6   : > { %v299_v11 = vpop.permute.xlu0 %298 }
 0x116   : > { %v371_v12 = vpop.f32.mrb[0].mxu0 }
 0x117   : > { %v372_v13 = vadd.f32 %v371_v12, %v299_v11  ;;  %v903_v14 = vpop.f32.mrb[1].mxu0 }
 0x119   : > { %v375_v15 = vmax.f32 %v372_v13, 0.0 }
 0x11b   : > { %383 = vrot.lane.b32.xlu1 %v375_v15, %s1096_s22  ;;  %379 = vrot.lane.b32.xlu0 %v375_v15, %s1097_s23  ;;  %s874_s22 = sshll.u32 %s1162_s28, 9  ;;  %s1304_s28 = scalar_lea.sflag [#allocation4], %s282_s18 }
 0x11c   : > { %905 = vmatpush3.msra.mxu1 %v375_v15  ;;  %s1302_s8 = scalar_lea.hbm %s1352_s7, %s874_s22 }
 0x11d   : > { %907 = vmatmul.mubr.msk.f32.vlgmr.msra.gmra.mrb[0].mxu1 %vm389_vm2, %v855_v16  ;;  %909 = vmatprep.subr.mxu1 %v1094_v1 }
 0x11e   : > { %911 = vmatprep.mubr.msk.f32.mxu1 %vm1093_vm0, %v1094_v1 }
 0x11f   : > { %630 = vperm.xlu0 %993, %v624_v17   ;;  %615 = vperm.xlu1 %994, %v612_v19  }
 0x123   : > { %640 = vperm.xlu0 %993, %v626_v18   ;;  %635 = vperm.xlu1 %994, %v625_v20  }
 0x127   : > { %645 = vperm.xlu1 %994, %v627_v21  }
 0x18d   : > { %v380_v25 = vpop.permute.xlu0 %379  ;;  %v384_v26 = vpop.permute.xlu1 %383 }
 0x18e   : > { %910 = vmatpush3.msk.msra.mxu1 %vm875_vm3, %v380_v25 }
 0x18f   : > { %912 = vmatmul.mubr.msk.f32.vlgmr.msra.gmra.mrb[2].mxu1 %vm389_vm2, %v386_v24  ;;  %914 = vmatprep.subr.mxu1 %v1094_v1 }
 0x190   : > { %915 = vmatpush3.msk.msra.mxu1 %vm876_vm4, %v384_v26  ;;  %916 = vmatprep.mubr.msk.f32.mxu1 %vm1093_vm0, %v1094_v1 }
 0x193   : > { %917 = vmatmul.mubr.msk.f32.vlgmr.msra.gmra.mrb[4].mxu1 %vm389_vm2, %v860_v27 }
 0x194   : > { %924 = vmatprep.mubr.msk.f32.mxu1 %vm389_vm2, %v622_v29 }
 0x19e   : > { %v616_v38 = vpop.permute.xlu1 %615  ;;  %v631_v43 = vpop.permute.xlu0 %630 }
 0x1a2   : > { %v636_v44 = vpop.permute.xlu1 %635  ;;  %v641_v45 = vpop.permute.xlu0 %640 }
 0x1a6   : > { %v646_v46 = vpop.permute.xlu1 %645 }
 0x1f0   : > { %v459_v30 = vpop.f32.mrb[0].mxu1 }
 0x1f1   : > { %v908_v31 = vpop.f32.mrb[1].mxu1 }
 0x262   : > { %v532_v32 = vpop.f32.mrb[2].mxu1 }
 0x263   : > { %v533_v33 = vadd.f32 %v532_v32, %v459_v30  ;;  %v913_v34 = vpop.f32.mrb[3].mxu1 }
 0x266   : > { %v607_v35 = vpop.f32.mrb[4].mxu1 }
 0x267   : > { %v611_v36 = vadd.f32 %v607_v35, %v533_v33  ;;  %v918_v37 = vpop.f32.mrb[5].mxu1 }
 0x269   : > { %v618_v39 = vadd.f32 %v616_v38, %v611_v36 }
 0x26b   : > { %v619_v40 = vmax.f32 %v618_v39, 0.0 }
 0x26d   : > { %919 = vmatprep.subr.mxu0 %v619_v40  ;;  %933 = vmatprep.subr.mxu1 %v619_v40 }
 0x26e   : > { %920 = vmatpush3.msra.mxu0 %v619_v40  ;;  %934 = vmatpush3.msra.mxu1 %v619_v40 }
 0x26f   : > { %922 = vmatmul.mubr.msk.f32.vlgmr.msra.gmra.mrb[2].mxu0 %vm389_vm2, %v621_v41  ;;  %925 = vmatmul.mubr.msk.f32.vlgmr.msra.gmra.mrb[6].mxu1 %vm389_vm2, %v623_v42 }
 0x342   : > { %v923_v47 = vpop.f32.mrb[2].mxu0  ;;  %v926_v48 = vpop.f32.mrb[6].mxu1 }
 0x343   : > { %v732_v49 = vadd.f32 %v923_v47, %v636_v44  ;;  %v742_v50 = vadd.f32 %v926_v48, %v646_v46  ;;  %v726_v51 = vpop.f32.mrb[3].mxu0  ;;  %v736_v52 = vpop.f32.mrb[7].mxu1 }
 0x344   : > { %v727_v53 = vadd.f32 %v726_v51, %v631_v43  ;;  %v737_v54 = vadd.f32 %v736_v52, %v641_v45 }
 0x345   : > { %v746_v55 = vadd.f32 %v732_v49, %v1233_v4  ;;  %v748_v56 = vadd.f32 %v742_v50, %v1239_v7 }
 0x346   : > { %v745_v57 = vadd.f32 %v727_v53, %v1231_v3  ;;  %v747_v58 = vadd.f32 %v737_v54, %v1235_v5 }
 0x347   : > { %v750_v59 = vmax.f32 %v746_v55, 0.0  ;;  %v752_v60 = vmax.f32 %v748_v56, 0.0 }
 0x348   : > { %v749_v61 = vmax.f32 %v745_v57, 0.0  ;;  %v751_v62 = vmax.f32 %v747_v58, 0.0 }
 0x349   : > { %754 = vst [vmem:[%s284_s20 + $0x8] sm:$0xff] %v750_v59  ;;  %756 = vst [vmem:[%s284_s20 + $0x18] sm:$0xff] %v752_v60 }
 0x34a   : > { %753 = vst [vmem:[%s284_s20] sm:$0xff] %v749_v61  ;;  %755 = vst [vmem:[%s284_s20 + $0x10] sm:$0xff] %v751_v62 }
 0x34b   : > { %1036 = shalt.err (!%p1033_p7)
}
 0x34c   : > { %s1037_s16 = scalar_lea.hbm %s1302_s8, 512  ;;  %s1041_s19 = scalar_lea.hbm %s1352_s7, 1024 }
 0x34d   : > { %p1038_p8 = scmp.ne.s32.totalorder %s1302_s8, %s1037_s16  ;;  %p1042_p1 = scmp.lt.u32.totalorder %s1302_s8, %s1352_s7 }
 0x34e   : > { %p1043_p0 = scmp.lt.u32.totalorder %s1041_s19, %s1037_s16  ;;  %p1045_p5 = scmp.lt.u32.totalorder %s1037_s16, %s1302_s8 }
 0x34f   : > { %p1039_p11 = pnand %p1038_p8, %p1363_p9 }
 0x350   : > { %p1044_p6 = por %p1043_p0, %p1042_p1 }
 0x351   : > { %p1040_p13 = pneg %p1039_p11 }
 0x352   : > { %p1046_p10 = por %p1045_p5, %p1044_p6 }
 0x354   : > { %p1047_p12 = pnand %p1046_p10, %p1040_p13 }
 0x356   : > { %1050 = shalt.err (!%p1047_p12)
}
 0x357   : > { %s1099_s23 = smov 128   ;;  %s1100_s29 = smov 8  }
 0x358   : > { %939 = dma.vmem_to_hbm [thread:$0]  (%p1363_p9), %s1297_s21, 512, %s1302_s8, %s1304_s28, %s1099_s23, %s1099_s23, %s1100_s29  }
 0x359 PF: > { %p951_p2 = scmp.ge.s32.totalorder %s1089_s27, 2  ;;  %s786_s9 = sand.u32 1, %s1077_s24  }
 0x35a   : > { %p1364_p3 = scmp.ne.s32.totalorder %s1357_s12, 0  ;;  %s787_s14 = scalar_lea.sflag [#allocation4], %s786_s9 }
 0x35c   : > { %p946_p4 = pnand %p951_p2, %p1364_p3 }
 0x35e   : > { %1072 = dma.done.wait (!%p946_p4), %s787_s14, 512  }
 0x35f   : > { %1074 = vsyncadd (!%p946_p4), %s787_s14, 4294966784  ;;  %p18_p7 = scmp.ge.s32.totalorder %s1166_s30, 4   ;;  %s1365_s24 = smov %s1081_s25 }
 0x360   : > { %s1366_s25 = smov %s1085_s26  ;;  %s1367_s26 = smov %s1177_s10 }
 0x361   : > { %s1368_s27 = smov %s1166_s30  ;;  %20 = sbr.rel (!%p18_p7) target bundleno = 4 (0x4), region = 90 }
 0x368   :  { %792 = vsyncpa [#allocation3], 1 }
 0x369   :  { %794 = vsyncpa [#allocation3 + $0x1], 1 }
 0x36a   :  { %795 = vsyncpa [#allocation4], 1 }
 0x36b   :  { %797 = vsyncpa [#allocation4 + $0x1], 1 }

</bundles_post_ra>
